<compile_context>
chip_gen: v7x
topology: tpu7x:2x2x1
jax: 0.10.0
libtpu: 0.0.40
codegen_flags: <defaults>
</compile_context>

<pallas_src>
import jax
import jax.numpy as jnp
from jax.experimental import pallas as pl
from jax.experimental.pallas import tpu as pltpu

NUM_CLASSES = 35
# Pad the class axis up to a sublane multiple; padded classes contribute exactly 0.
_C_PAD = ((NUM_CLASSES + 7) // 8) * 8  # 40


def _segexp_kernel(x_ref, y_ref, out_ref):
    # x_ref : (B*C, HW) f32 in VMEM  (row = batch*C + channel)
    # y_ref : (B, HW)   i32 in VMEM
    # out_ref: (1, 1)   f32 in SMEM  — scalar loss
    bc, hw = x_ref.shape
    b = y_ref.shape[0]
    c = bc // b
    inv_c = 1.0 / float(c)

    cls_iota = jax.lax.broadcasted_iota(jnp.int32, (_C_PAD, hw), 0)  # row = class id

    def load_xm(j):
        # Channel mean for batch element j from contiguous rows; pure VPU adds,
        # no reshape to a sub-8-sublane (C=4) shape anywhere.
        acc = x_ref[pl.ds(j * c, 1), :]
        for ch in range(1, c):
            acc = acc + x_ref[pl.ds(j * c + ch, 1), :]
        return acc * inv_c  # (1, HW)

    def step(j, carry):
        sx, sx2, nnz, cnt = carry
        xm_j = load_xm(j)                                   # (1, HW)
        y_j = y_ref[pl.ds(j, 1), :]                         # (1, HW)
        sx = sx + xm_j
        sx2 = sx2 + xm_j * xm_j
        nnz = nnz + (xm_j != 0.0).astype(jnp.float32)
        cnt = cnt + (y_j == cls_iota).astype(jnp.float32)
        return sx, sx2, nnz, cnt

    zeros_row = jnp.zeros((1, hw), jnp.float32)
    carry0 = (zeros_row, zeros_row, zeros_row, jnp.zeros((_C_PAD, hw), jnp.float32))

    if b <= 8:
        # Tiny batch (B=2 at the module's shape): fully unrolled.
        carry = carry0
        for j in range(b):
            carry = step(j, carry)
    else:
        # Larger batches: fori_loop carry keeps vreg pressure flat.
        carry = jax.lax.fori_loop(0, b, step, carry0, unroll=4)
    sx, sx2, nnz, cnt = carry

    # All three class-wise reductions as ONE small MXU matmul:
    #   (C_PAD, HW) @ (HW, 8) -> (C_PAD, 8), columns [nnz, sx, sx2, 0...].
    stats = jnp.concatenate(
        [nnz, sx, sx2, jnp.zeros((5, hw), jnp.float32)], axis=0)        # (8, HW)
    t = jnp.dot(cnt, stats.T, preferred_element_type=jnp.float32)       # (C_PAD, 8)
    t0 = t[:, 0:1]   # sum_p cnt * nnz
    t1 = t[:, 1:2]   # sum_p cnt * sx
    t2 = t[:, 2:3]   # sum_p cnt * sx2

    n = float(b) * float(b) * float(hw)   # element count of the (B, B, H, W) broadcast
    inv_n = 1.0 / n
    d2 = t1 * inv_n                                          # per-class mean of a2
    d3 = (t2 - 2.0 * d2 * t1 + d2 * d2 * t0) * inv_n         # per-class d3

    valid = jax.lax.broadcasted_iota(jnp.int32, (_C_PAD, 1), 0) < NUM_CLASSES
    out_ref[0, 0] = jnp.sum(jnp.where(valid, d3, 0.0))


def l_segexp(x, y):
    """x: (B, C, H, W) float32, y: (B, H, W) int labels in [0, 35). Returns scalar f32."""
    b, c, h, w = x.shape
    hw = h * w
    # Lane-dense layout; keep x as (B*C, HW) so no minor-2 dim of 4 (no sublane padding).
    x2 = x.reshape(b * c, hw).astype(jnp.float32)
    y2 = y.reshape(b, hw).astype(jnp.int32)

    flops = (
        2 * b * c * hw            # channel means
        + 6 * b * hw              # per-position batch stats
        + 2 * b * _C_PAD * hw     # one-hot compare + accumulate
        + 2 * _C_PAD * hw * 8     # stats matmul
        + 10 * _C_PAD             # per-class epilogue
    )
    bytes_accessed = (b * c * hw) * 4 + (b * hw) * 4 + 4

    out = pl.pallas_call(
        _segexp_kernel,
        out_shape=jax.ShapeDtypeStruct((1, 1), jnp.float32),
        in_specs=[
            pl.BlockSpec(memory_space=pltpu.MemorySpace.VMEM),
            pl.BlockSpec(memory_space=pltpu.MemorySpace.VMEM),
        ],
        out_specs=pl.BlockSpec(memory_space=pltpu.MemorySpace.SMEM),
        cost_estimate=pl.CostEstimate(
            flops=flops, transcendentals=0, bytes_accessed=bytes_accessed),
    )(x2, y2)
    return out[0, 0]


def l_segexp_ref(x, y, num_classes=NUM_CLASSES):
    """Pure-JAX reference mirroring the PyTorch forward (O(B^2) broadcast)."""
    xm = jnp.mean(x, axis=1)                      # (B, H, W)
    d = jnp.float32(0.0)
    for i in range(num_classes):
        mask = (y == i)
        a2 = jnp.where(mask[None, :, :, :], xm[:, None, :, :], 0.0)   # (B, B, H, W)
        d2 = jnp.mean(a2)
        a2 = jnp.where(a2 == 0.0, d2, a2)
        d3 = jnp.mean((a2 - d2) ** 2)
        d = d + d3
    return d


if __name__ == "__main__":
    key = jax.random.PRNGKey(0)
    kx, ky = jax.random.split(key)
    B, C, H, W = 2, 4, 16, 16
    x = jax.random.normal(kx, (B, C, H, W), dtype=jnp.float32)
    y = jax.random.randint(ky, (B, H, W), 0, NUM_CLASSES, dtype=jnp.int32)

    out = jax.block_until_ready(l_segexp(x, y))
    ref = jax.block_until_ready(l_segexp_ref(x, y))

    # Tolerance accounts for the MXU f32 matmul possibly running bf16 input
    # passes at default precision (error bound ~2e-3 relative at this shape).
    assert jnp.allclose(out, ref, rtol=5e-3, atol=1e-6), (out, ref)
    print("KERNEL_OK")
</pallas_src>

<mosaic_0001>
module attributes {stable_mosaic.version = 11 : i64} {
  func.func @_segexp_kernel(%arg0: memref<8x256xf32, #tpu.memory_space<vmem>>, %arg1: memref<2x256xi32, #tpu.memory_space<vmem>>, %arg2: memref<1x1xf32, #tpu.memory_space<smem>>) attributes {dimension_semantics = [], scalar_prefetch = 0 : i64, scratch_operands = 0 : i64, tpu.core_type = #tpu.core_type<tc>} {
    %0 = tpu.iota {dimensions = array<i32: 0>} : vector<40x256xi32>
    %cst = arith.constant 0.000000e+00 : f32
    %1 = vector.broadcast %cst : f32 to vector<1x256xf32>
    %cst_0 = arith.constant 0.000000e+00 : f32
    %2 = vector.broadcast %cst_0 : f32 to vector<40x256xf32>
    %c0 = arith.constant 0 : index
    %c0_1 = arith.constant 0 : index
    %3 = vector.load %arg0[%c0, %c0_1] : memref<8x256xf32, #tpu.memory_space<vmem>>, vector<1x256xf32>
    %c1 = arith.constant 1 : index
    %c0_2 = arith.constant 0 : index
    %4 = vector.load %arg0[%c1, %c0_2] : memref<8x256xf32, #tpu.memory_space<vmem>>, vector<1x256xf32>
    %5 = arith.addf %3, %4 : vector<1x256xf32>
    %c2 = arith.constant 2 : index
    %c0_3 = arith.constant 0 : index
    %6 = vector.load %arg0[%c2, %c0_3] : memref<8x256xf32, #tpu.memory_space<vmem>>, vector<1x256xf32>
    %7 = arith.addf %5, %6 : vector<1x256xf32>
    %c3 = arith.constant 3 : index
    %c0_4 = arith.constant 0 : index
    %8 = vector.load %arg0[%c3, %c0_4] : memref<8x256xf32, #tpu.memory_space<vmem>>, vector<1x256xf32>
    %9 = arith.addf %7, %8 : vector<1x256xf32>
    %cst_5 = arith.constant 2.500000e-01 : f32
    %10 = vector.broadcast %cst_5 : f32 to vector<1x256xf32>
    %11 = arith.mulf %9, %10 : vector<1x256xf32>
    %c0_6 = arith.constant 0 : index
    %c0_7 = arith.constant 0 : index
    %12 = vector.load %arg1[%c0_6, %c0_7] : memref<2x256xi32, #tpu.memory_space<vmem>>, vector<1x256xi32>
    %13 = arith.addf %1, %11 : vector<1x256xf32>
    %14 = arith.mulf %11, %11 : vector<1x256xf32>
    %15 = arith.addf %1, %14 : vector<1x256xf32>
    %cst_8 = arith.constant 0.000000e+00 : f32
    %16 = vector.broadcast %cst_8 : f32 to vector<1x256xf32>
    %17 = arith.cmpf one, %11, %16 : vector<1x256xf32>
    %18 = arith.extui %17 : vector<1x256xi1> to vector<1x256xi32>
    %19 = arith.sitofp %18 : vector<1x256xi32> to vector<1x256xf32>
    %20 = arith.addf %1, %19 : vector<1x256xf32>
    %21 = vector.broadcast %12 : vector<1x256xi32> to vector<40x256xi32>
    %22 = arith.cmpi eq, %21, %0 : vector<40x256xi32>
    %23 = arith.extui %22 : vector<40x256xi1> to vector<40x256xi32>
    %24 = arith.sitofp %23 : vector<40x256xi32> to vector<40x256xf32>
    %25 = arith.addf %2, %24 : vector<40x256xf32>
    %c4 = arith.constant 4 : index
    %c0_9 = arith.constant 0 : index
    %26 = vector.load %arg0[%c4, %c0_9] : memref<8x256xf32, #tpu.memory_space<vmem>>, vector<1x256xf32>
    %c5 = arith.constant 5 : index
    %c0_10 = arith.constant 0 : index
    %27 = vector.load %arg0[%c5, %c0_10] : memref<8x256xf32, #tpu.memory_space<vmem>>, vector<1x256xf32>
    %28 = arith.addf %26, %27 : vector<1x256xf32>
    %c6 = arith.constant 6 : index
    %c0_11 = arith.constant 0 : index
    %29 = vector.load %arg0[%c6, %c0_11] : memref<8x256xf32, #tpu.memory_space<vmem>>, vector<1x256xf32>
    %30 = arith.addf %28, %29 : vector<1x256xf32>
    %c7 = arith.constant 7 : index
    %c0_12 = arith.constant 0 : index
    %31 = vector.load %arg0[%c7, %c0_12] : memref<8x256xf32, #tpu.memory_space<vmem>>, vector<1x256xf32>
    %32 = arith.addf %30, %31 : vector<1x256xf32>
    %cst_13 = arith.constant 2.500000e-01 : f32
    %33 = vector.broadcast %cst_13 : f32 to vector<1x256xf32>
    %34 = arith.mulf %32, %33 : vector<1x256xf32>
    %c1_14 = arith.constant 1 : index
    %c0_15 = arith.constant 0 : index
    %35 = vector.load %arg1[%c1_14, %c0_15] : memref<2x256xi32, #tpu.memory_space<vmem>>, vector<1x256xi32>
    %36 = arith.addf %13, %34 : vector<1x256xf32>
    %37 = arith.mulf %34, %34 : vector<1x256xf32>
    %38 = arith.addf %15, %37 : vector<1x256xf32>
    %cst_16 = arith.constant 0.000000e+00 : f32
    %39 = vector.broadcast %cst_16 : f32 to vector<1x256xf32>
    %40 = arith.cmpf one, %34, %39 : vector<1x256xf32>
    %41 = arith.extui %40 : vector<1x256xi1> to vector<1x256xi32>
    %42 = arith.sitofp %41 : vector<1x256xi32> to vector<1x256xf32>
    %43 = arith.addf %20, %42 : vector<1x256xf32>
    %44 = vector.broadcast %35 : vector<1x256xi32> to vector<40x256xi32>
    %45 = arith.cmpi eq, %44, %0 : vector<40x256xi32>
    %46 = arith.extui %45 : vector<40x256xi1> to vector<40x256xi32>
    %47 = arith.sitofp %46 : vector<40x256xi32> to vector<40x256xf32>
    %48 = arith.addf %25, %47 : vector<40x256xf32>
    %cst_17 = arith.constant 0.000000e+00 : f32
    %49 = vector.broadcast %cst_17 : f32 to vector<5x256xf32>
    %50 = tpu.concatenate %43, %36, %38, %49 in 0 : vector<1x256xf32>, vector<1x256xf32>, vector<1x256xf32>, vector<5x256xf32> -> vector<8x256xf32>
    %51 = tpu.transpose %50, [1, 0] : vector<8x256xf32> -> vector<256x8xf32>
    %cst_18 = arith.constant dense<0.000000e+00> : vector<40x8xf32>
    %52 = tpu.matmul %48, %51, %cst_18 {dimension_numbers = #tpu.dot_dimension_numbers<[1], [0], [0], [1], [0, 0, 1, 1], [], []>} : vector<40x256xf32>, vector<256x8xf32>, vector<40x8xf32> -> vector<40x8xf32>
    %53 = vector.extract_strided_slice %52 {offsets = [0, 0], sizes = [40, 1], strides = [1, 1]} : vector<40x8xf32> to vector<40x1xf32>
    %54 = vector.extract_strided_slice %52 {offsets = [0, 1], sizes = [40, 1], strides = [1, 1]} : vector<40x8xf32> to vector<40x1xf32>
    %55 = vector.extract_strided_slice %52 {offsets = [0, 2], sizes = [40, 1], strides = [1, 1]} : vector<40x8xf32> to vector<40x1xf32>
    %cst_19 = arith.constant 9.765625E-4 : f32
    %56 = vector.broadcast %cst_19 : f32 to vector<40x1xf32>
    %57 = arith.mulf %54, %56 : vector<40x1xf32>
    %cst_20 = arith.constant 2.000000e+00 : f32
    %58 = vector.broadcast %cst_20 : f32 to vector<40x1xf32>
    %59 = arith.mulf %58, %57 : vector<40x1xf32>
    %60 = arith.mulf %59, %54 : vector<40x1xf32>
    %61 = arith.subf %55, %60 : vector<40x1xf32>
    %62 = arith.mulf %57, %57 : vector<40x1xf32>
    %63 = arith.mulf %62, %53 : vector<40x1xf32>
    %64 = arith.addf %61, %63 : vector<40x1xf32>
    %cst_21 = arith.constant 9.765625E-4 : f32
    %65 = vector.broadcast %cst_21 : f32 to vector<40x1xf32>
    %66 = arith.mulf %64, %65 : vector<40x1xf32>
    %67 = tpu.iota {dimensions = array<i32: 0>} : vector<40x1xi32>
    %c35_i32 = arith.constant 35 : i32
    %68 = vector.broadcast %c35_i32 : i32 to vector<40x1xi32>
    %69 = arith.cmpi slt, %67, %68 : vector<40x1xi32>
    %cst_22 = arith.constant 0.000000e+00 : f32
    %70 = vector.broadcast %cst_22 : f32 to vector<40x1xf32>
    %71 = arith.select %69, %66, %70 : vector<40x1xi1>, vector<40x1xf32>
    %72 = vector.shape_cast %71 : vector<40x1xf32> to vector<1x40x1xf32>
    %cst_23 = arith.constant dense<0.000000e+00> : vector<1xf32>
    %73 = vector.multi_reduction <add>, %72, %cst_23 [1, 2] : vector<1x40x1xf32> to vector<1xf32>
    %74 = vector.shape_cast %73 : vector<1xf32> to vector<1x1x1xf32>
    %75 = vector.extract %74[0, 0, 0] : f32 from vector<1x1x1xf32>
    %c0_24 = arith.constant 0 : index
    %c0_25 = arith.constant 0 : index
    %76 = memref.load %arg2[%c0_24, %c0_25] : memref<1x1xf32, #tpu.memory_space<smem>>
    memref.store %75, %arg2[%c0_24, %c0_25] : memref<1x1xf32, #tpu.memory_space<smem>>
    return
  }
}

</mosaic_0001>

<bundles_post_ra>
// kernel: tpu_custom_call.1
= control target key start
LH: loop header
LB: loop body
LE: loop exit
PB: predicated region body
PF: predicated region fallthrough
CT: control target
= control target key end

     0   :  { %7 = vsyncpa [#allocation3], 0  ;;  %s769_s0 = inlined_call_operand.hbm [shape: f32[8,256], index: 0, kind: input, shape index: {}]   ;;  %s770_s1 = inlined_call_operand.hbm [shape: s32[2,256], index: 1, kind: input, shape index: {}]   ;;  %s771_s2 = inlined_call_operand.hbm [shape: f32[1,1], index: 2, kind: output, shape index: {}]  }
   0x1   :  { %8 = vsyncpa [#allocation6], 0 }
   0x2   :  { %9 = vsyncpa [#allocation4], 0  ;;  %s570_s9 = smov [#allocation2]   ;;  %s571_s11 = smov [#allocation5]  }
   0x3   :  { %s16_s10 = sshll.u32 %s570_s9, 4  ;;  %s26_s12 = sshll.u32 %s571_s11, 4  ;;  %s17_s10 = int_to_ptr.vmem [resolvable:$true] %s16_s10  ;;  %s27_s12 = int_to_ptr.vmem [resolvable:$true] %s26_s12 }
   0x4   :  { %s510_s15 = scalar_lea.hbm %s769_s0, 256 }
   0x5   :  { %p511_p0 = scmp.ne.s32.totalorder %s769_s0, %s510_s15  ;;  %p514_p1 = scmp.lt.u32.totalorder %s510_s15, %s769_s0 }
   0x7   :  { %p516_p2 = pnand %p514_p1, %p511_p0 }
   0x9   :  { %519 = shalt.err (!%p516_p2)
}
   0xa   :  { %s520_s20 = scalar_lea.vmem %s17_s10, 256  ;;  %p525_p4 = scmp.lt.s32.totalorder %s17_s10, %s17_s10 }
   0xb   :  { %p521_p3 = scmp.ne.s32.totalorder %s17_s10, %s520_s20  ;;  %p526_p5 = scmp.lt.s32.totalorder %s520_s20, %s520_s20 }
   0xd   :  { %p527_p6 = por %p526_p5, %p525_p4 }
   0xf   :  { %p528_p7 = pnand %p527_p6, %p521_p3 }
  0x11   :  { %531 = shalt.err (!%p528_p7)
}
  0x12   :  { %19 = dma.hbm_to_vmem [thread:$0]  %s769_s0, 256, %s17_s10, [#allocation3]  }
  0x13   :  { %s532_s25 = scalar_lea.hbm %s770_s1, 64 }
  0x14   :  { %p533_p8 = scmp.ne.s32.totalorder %s770_s1, %s532_s25  ;;  %p536_p9 = scmp.lt.u32.totalorder %s532_s25, %s770_s1 }
  0x16   :  { %p538_p10 = pnand %p536_p9, %p533_p8 }
  0x18   :  { %541 = shalt.err (!%p538_p10)
}
  0x19   :  { %s542_s30 = scalar_lea.vmem %s27_s12, 64  ;;  %p547_p12 = scmp.lt.s32.totalorder %s27_s12, %s27_s12 }
  0x1a   :  { %p543_p11 = scmp.ne.s32.totalorder %s27_s12, %s542_s30  ;;  %p548_p13 = scmp.lt.s32.totalorder %s542_s30, %s542_s30 }
  0x1c   :  { %p549_p0 = por %p548_p13, %p547_p12 }
  0x1e   :  { %p550_p1 = pnand %p549_p0, %p543_p11 }
  0x20   :  { %553 = shalt.err (!%p550_p1)
}
  0x21   :  { %29 = dma.hbm_to_vmem [thread:$0]  %s770_s1, 64, %s27_s12, [#allocation6]  }
  0x22   :  { %564 = dma.done.wait [#allocation3], 256  }
  0x23   :  { %565 = vsyncadd [#allocation3], 4294967040 }
  0x24   :  { %566 = dma.done.wait [#allocation6], 64  }
  0x25   :  { %567 = vsyncadd [#allocation6], 4294967232  ;;  %v36_v0 = vlaneseq  ;;  %v42_v4 = vld [vmem:[#allocation2] ss:$8 sm:$0x3]  ;;  %vm211_vm0 = vcmask 1040384  }
  0x26   :  { %v44_v5 = vld [vmem:[#allocation2 + $0x1] ss:$8 sm:$0x3]  ;;  %v47_v7 = vld [vmem:[#allocation2 + $0x2] ss:$8 sm:$0x3] }
  0x27   :  { %v615_v1 = vshrl.u32 %v36_v0, 7  ;;  %v45_v6 = vadd.f32 %v44_v5, %v42_v4  ;;  %v50_v8 = vld [vmem:[#allocation2 + $0x3] ss:$8 sm:$0x3]  ;;  %vm214_vm1 = vcmask 1041408   ;;  %vm217_vm4 = vcmask 1042432  }
  0x28   :  { %v110_v9 = vld [vmem:[#allocation2 + $0x4] ss:$8 sm:$0x3]  ;;  %v112_v10 = vld [vmem:[#allocation2 + $0x5] ss:$8 sm:$0x3] }
  0x29   :  { %v618_v2 = vsub.s32 1, %v615_v1  ;;  %v621_v3 = vsub.s32 0, %v615_v1  ;;  %v48_v11 = vadd.f32 %v47_v7, %v45_v6  ;;  %v113_v12 = vadd.f32 %v112_v10, %v110_v9  ;;  %v115_v13 = vld [vmem:[#allocation2 + $0x6] ss:$8 sm:$0x3]  ;;  %s573_s1 = smov 1  }
  0x2a   :  { %v118_v14 = vld [vmem:[#allocation2 + $0x7] ss:$8 sm:$0x3]  ;;  %v53_v15 = vld [vmem:[#allocation5] ss:$2 sm:$0x3] }
  0x2b   :  { %v122_v16 = vld [vmem:[#allocation5 + $0x1] ss:$2 sm:$0x3]  ;;  %v51_v17 = vadd.f32 %v50_v8, %v48_v11  ;;  %v116_v18 = vadd.f32 %v115_v13, %v113_v12  ;;  %v624_v19 = vrot.slane %v53_v15, %v621_v3  ;;  %v627_v20 = vrot.slane %v53_v15, %v618_v2  ;;  %s574_s4 = smov 126   ;;  %s554_s8 = scalar_lea.hbm %s771_s2, 16 }
  0x2c   :  { %v630_v21 = vrot.slane %v122_v16, %v621_v3  ;;  %v633_v22 = vrot.slane %v122_v16, %v618_v2  ;;  %v636_v23 = vadd.s32 8, %v615_v1  ;;  %v639_v24 = vadd.s32 24, %v615_v1  ;;  %p555_p2 = scmp.ne.s32.totalorder %s771_s2, %s554_s8  ;;  %p558_p3 = scmp.lt.u32.totalorder %s554_s8, %s771_s2 }
  0x2d   :  { %v52_v25 = vmul.f32 0.25, %v51_v17  ;;  %v119_v26 = vadd.f32 %v118_v14, %v116_v18  ;;  %vm70_vm2 = vcmp.eq.s32.totalorder %v627_v20, %v615_v1  ;;  %vm69_vm3 = vcmp.eq.s32.totalorder %v624_v19, %v615_v1 }
  0x2e   :  { %v572_v27 = vmov 0.0   ;;  %vm139_vm5 = vcmp.eq.s32.totalorder %v633_v22, %v615_v1  ;;  %vm138_vm6 = vcmp.eq.s32.totalorder %v630_v21, %v615_v1  ;;  %v651_v29 = vadd.s32 16, %v615_v1  ;;  %p560_p4 = pnand %p558_p3, %p555_p2 }
  0x2f   :  { %v478_v28 = vsel %vm70_vm2, 1.0, %v572_v27  ;;  %v55_v30 = vmul.f32 %v52_v25, %v52_v25  ;;  %vm57_vm7 = vcmp.ne.f32.partialorder %v52_v25, 0.0  ;;  %v120_v31 = vmul.f32 0.25, %v119_v26 }
  0x30   :  { %v489_v32 = vsel %vm139_vm5, 1.0, %v572_v27  ;;  %v476_v33 = vsel %vm57_vm7, 1.0, %v572_v27  ;;  %v477_v35 = vsel %vm69_vm3, 1.0, %v572_v27  ;;  %vm72_vm8 = vcmp.eq.s32.totalorder %v627_v20, %v636_v23 }
  0x31   :  { %v169_v34 = vadd.f32 %v489_v32, %v478_v28  ;;  %v123_v36 = vadd.f32 %v120_v31, %v52_v25  ;;  %v124_v37 = vmul.f32 %v120_v31, %v120_v31  ;;  %vm126_vm9 = vcmp.ne.f32.partialorder %v120_v31, 0.0 }
  0x32   :  { %v488_v38 = vsel %vm138_vm6, 1.0, %v572_v27  ;;  %v487_v39 = vsel %vm126_vm9, 1.0, %v572_v27  ;;  %v480_v40 = vsel %vm72_vm8, 1.0, %v572_v27  ;;  %vm141_vm10 = vcmp.eq.s32.totalorder %v633_v22, %v636_v23 }
  0x33   :  { %284 = vmatprep.mubr.f32.mxu0 %v169_v34  ;;  %vm76_vm11 = vcmp.eq.s32.totalorder %v627_v20, %v639_v24  ;;  %v125_v41 = vadd.f32 %v124_v37, %v55_v30  ;;  %v129_v42 = vadd.f32 %v487_v39, %v476_v33  ;;  %v197_v43 = vrot.slane %v123_v36, %v618_v2 }
  0x34   :  { %v193_v44 = vrot.slane %v123_v36, %v621_v3  ;;  %v491_v45 = vsel %vm141_vm10, 1.0, %v572_v27  ;;  %v484_v46 = vsel %vm76_vm11, 1.0, %v572_v27  ;;  %vm145_vm12 = vcmp.eq.s32.totalorder %v633_v22, %v639_v24 }
  0x35   :  { %vm71_vm13 = vcmp.eq.s32.totalorder %v624_v19, %v636_v23  ;;  %v186_v47 = vrot.slane %v129_v42, %v618_v2  ;;  %v208_v48 = vrot.slane %v125_v41, %v618_v2  ;;  %v182_v49 = vrot.slane %v129_v42, %v621_v3 }
  0x36   :  { %v204_v50 = vrot.slane %v125_v41, %v621_v3  ;;  %v168_v51 = vadd.f32 %v488_v38, %v477_v35  ;;  %v171_v52 = vadd.f32 %v491_v45, %v480_v40  ;;  %v495_v53 = vsel %vm145_vm12, 1.0, %v572_v27 }
  0x37   :  { %v679_v54 = vadd.s32 32, %v615_v1  ;;  %v213_v55 = vsel %vm211_vm0, %v186_v47, %v197_v43  ;;  %v212_v56 = vsel %vm211_vm0, %v182_v49, %v193_v44  ;;  %v175_v57 = vadd.f32 %v495_v53, %v484_v46 }
  0x38   :  { %vm140_vm14 = vcmp.eq.s32.totalorder %v630_v21, %v636_v23  ;;  %v216_v58 = vsel %vm214_vm1, %v213_v55, %v208_v48  ;;  %v215_v59 = vsel %vm214_vm1, %v212_v56, %v204_v50  ;;  %v479_v60 = vsel %vm71_vm13, 1.0, %v572_v27 }
  0x39   :  { %vm75_vm15 = vcmp.eq.s32.totalorder %v624_v19, %v639_v24  ;;  %498 = vmatprep.subr.msk.mxu0 %vm217_vm4, %v216_v58  ;;  %500 = vmatprep.subr.msk.mxu1 %vm217_vm4, %v216_v58  ;;  %vm144_vm0 = vcmp.eq.s32.totalorder %v630_v21, %v639_v24  ;;  %vm74_vm2 = vcmp.eq.s32.totalorder %v627_v20, %v651_v29  ;;  %v490_v62 = vsel %vm140_vm14, 1.0, %v572_v27 }
  0x3a   :  { %v483_v61 = vsel %vm75_vm15, 1.0, %v572_v27  ;;  %vm143_vm1 = vcmp.eq.s32.totalorder %v633_v22, %v651_v29  ;;  %499 = vmatpush1.xpose.msk.msra.mxu0 %vm217_vm4, %v215_v59  ;;  %501 = vmatpush1.xpose.msk.msra.mxu1 %vm217_vm4, %v215_v59  ;;  %v494_v63 = vsel %vm144_vm0, 1.0, %v572_v27  ;;  %v482_v0 = vsel %vm74_vm2, 1.0, %v572_v27 }
  0x3b   :  { %vm78_vm3 = vcmp.eq.s32.totalorder %v627_v20, %v679_v54  ;;  %299 = vmatprep.mubr.f32.mxu1 %v175_v57  ;;  %v174_v1 = vadd.f32 %v494_v63, %v483_v61  ;;  %v493_v2 = vsel %vm143_vm1, 1.0, %v572_v27  ;;  %vm147_vm5 = vcmp.eq.s32.totalorder %v633_v22, %v679_v54 }
  0x3c   :  { %v486_v3 = vsel %vm78_vm3, 1.0, %v572_v27  ;;  %v497_v4 = vsel %vm147_vm5, 1.0, %v572_v27  ;;  %vm73_vm4 = vcmp.eq.s32.totalorder %v624_v19, %v651_v29  ;;  %vm142_vm6 = vcmp.eq.s32.totalorder %v630_v21, %v651_v29 }
  0x3d   :  { %vm77_vm7 = vcmp.eq.s32.totalorder %v624_v19, %v679_v54  ;;  %285 = vmatmul.mubr.f32.vlgmr.msra.gmra.mrb[0].mxu0 %v168_v51  ;;  %v170_v5 = vadd.f32 %v490_v62, %v479_v60  ;;  %300 = vmatmul.mubr.f32.vlgmr.msra.gmra.mrb[0].mxu1 %v174_v1  ;;  %v177_v6 = vadd.f32 %v497_v4, %v486_v3  ;;  %v481_v9 = vsel %vm73_vm4, 1.0, %v572_v27 }
  0x3e   :  { %v485_v7 = vsel %vm77_vm7, 1.0, %v572_v27  ;;  %289 = vmatprep.mubr.f32.mxu0 %v171_v52  ;;  %v173_v8 = vadd.f32 %v493_v2, %v482_v0  ;;  %v492_v10 = vsel %vm142_vm6, 1.0, %v572_v27  ;;  %vm146_vm8 = vcmp.eq.s32.totalorder %v630_v21, %v679_v54 }
  0x3f   :  { %304 = vmatprep.mubr.f32.mxu1 %v177_v6  ;;  %v496_v11 = vsel %vm146_vm8, 1.0, %v572_v27  ;;  %v172_v13 = vadd.f32 %v492_v10, %v481_v9  ;;  %vm414_vm9 = vcmp.lt.s32.totalorder %v679_v54, 35  ;;  %vm440_vm10 = vcmask 7168  }
  0x40   :  { %v176_v12 = vadd.f32 %v496_v11, %v485_v7 }
  0x41   :  { %290 = vmatmul.mubr.f32.gmra.mrb[2].mxu0 %v170_v5 }
  0x42   :  { %294 = vmatprep.mubr.f32.mxu0 %v173_v8  ;;  %305 = vmatmul.mubr.f32.gmra.mrb[2].mxu1 %v176_v12 }
  0x45   :  { %295 = vmatmul.mubr.f32.gmra.mrb[4].mxu0 %v172_v13 }
 0x110   :  { %v723_v14 = vpop.f32.mrb[0].mxu0  ;;  %v725_v15 = vpop.f32.mrb[0].mxu1 }
 0x111   :  { %360 = vrot.lane.b32.xlu0 %v723_v14, %s573_s1  ;;  %v288_v16 = vpop.f32.mrb[1].mxu0  ;;  %v313_v17 = vmul.f32 0.0009765625, %v725_v15  ;;  %v303_v18 = vpop.f32.mrb[1].mxu1  ;;  %v310_v24 = vmul.f32 0.0009765625, %v723_v14 }
 0x113   :  { %v318_v22 = vmul.f32 2.0, %v313_v17  ;;  %v315_v31 = vmul.f32 2.0, %v310_v24  ;;  %v350_v37 = vmul.f32 %v310_v24, %v310_v24  ;;  %v353_v51 = vmul.f32 %v313_v17, %v313_v17 }
 0x114   :  { %v291_v19 = vpop.f32.mrb[2].mxu0 }
 0x115   :  { %362 = vrot.lane.b32.xlu0 %v291_v19, %s573_s1  ;;  %v293_v20 = vpop.f32.mrb[3].mxu0  ;;  %v731_v21 = vpop.f32.mrb[2].mxu1  ;;  %v311_v25 = vmul.f32 0.0009765625, %v291_v19  ;;  %v323_v28 = vmul.f32 %v318_v22, %v725_v15  ;;  %v320_v33 = vmul.f32 %v315_v31, %v723_v14 }
 0x116   :  { %v308_v23 = vpop.f32.mrb[3].mxu1  ;;  %v314_v36 = vmul.f32 0.0009765625, %v731_v21 }
 0x117   :  { %v316_v30 = vmul.f32 2.0, %v311_v25  ;;  %v351_v41 = vmul.f32 %v311_v25, %v311_v25 }
 0x118   :  { %v296_v26 = vpop.f32.mrb[4].mxu0  ;;  %v319_v40 = vmul.f32 2.0, %v314_v36  ;;  %v354_v45 = vmul.f32 %v314_v36, %v314_v36 }
 0x119   :  { %368 = vrot.lane.b32.xlu0 %v731_v21, %s573_s1  ;;  %364 = vrot.lane.b32.xlu1 %v296_v26, %s573_s1  ;;  %v298_v27 = vpop.f32.mrb[5].mxu0  ;;  %v312_v29 = vmul.f32 0.0009765625, %v296_v26  ;;  %v321_v32 = vmul.f32 %v316_v30, %v291_v19 }
 0x11a   :  { %v324_v44 = vmul.f32 %v319_v40, %v731_v21 }
 0x11b   :  { %v317_v34 = vmul.f32 2.0, %v312_v29  ;;  %v352_v46 = vmul.f32 %v312_v29, %v312_v29 }
 0x11d   :  { %336 = vrot.lane.b32.xlu0 %v323_v28, %s573_s1  ;;  %366 = vrot.lane.b32.xlu1 %v725_v15, %s573_s1  ;;  %v322_v35 = vmul.f32 %v317_v34, %v296_v26 }
 0x121   :  { %332 = vrot.lane.b32.xlu0 %v321_v32, %s573_s1  ;;  %330 = vrot.lane.b32.xlu1 %v320_v33, %s573_s1 }
 0x125   :  { %334 = vrot.lane.b32.xlu1 %v322_v35, %s573_s1 }
 0x183   :  { %v361_v38 = vpop.permute.xlu0 %360 }
 0x184   :  { %v375_v39 = vmul.f32 %v361_v38, %v350_v37 }
 0x186   :  { %385 = vrot.lane.b32.xlu0 %v375_v39, %s573_s1 }
 0x187   :  { %v363_v42 = vpop.permute.xlu0 %362 }
 0x188   :  { %v376_v43 = vmul.f32 %v363_v42, %v351_v41 }
 0x18a   :  { %338 = vrot.lane.b32.xlu0 %v324_v44, %s573_s1  ;;  %387 = vrot.lane.b32.xlu1 %v376_v43, %s573_s1 }
 0x18b   :  { %v369_v47 = vpop.permute.xlu0 %368  ;;  %v365_v48 = vpop.permute.xlu1 %364 }
 0x18c   :  { %v379_v49 = vmul.f32 %v369_v47, %v354_v45  ;;  %v377_v50 = vmul.f32 %v365_v48, %v352_v46 }
 0x18e   :  { %393 = vrot.lane.b32.xlu0 %v379_v49, %s573_s1  ;;  %389 = vrot.lane.b32.xlu1 %v377_v50, %s573_s1 }
 0x18f   :  { %v367_v52 = vpop.permute.xlu1 %366  ;;  %v337_v55 = vpop.permute.xlu0 %336 }
 0x190   :  { %v378_v53 = vmul.f32 %v367_v52, %v353_v51  ;;  %v348_v10 = vsub.f32 %v725_v15, %v337_v55 }
 0x192   :  { %391 = vrot.lane.b32.xlu1 %v378_v53, %s573_s1 }
 0x193   :  { %v331_v56 = vpop.permute.xlu1 %330  ;;  %v333_v57 = vpop.permute.xlu0 %332 }
 0x194   :  { %v345_v58 = vsub.f32 %v723_v14, %v331_v56  ;;  %v346_v62 = vsub.f32 %v291_v19, %v333_v57 }
 0x197   :  { %v335_v59 = vpop.permute.xlu1 %334 }
 0x198   :  { %v347_v3 = vsub.f32 %v296_v26, %v335_v59 }
 0x1f8   :  { %v386_v60 = vpop.permute.xlu0 %385 }
 0x1f9   :  { %v400_v61 = vadd.f32 %v386_v60, %v345_v58 }
 0x1fb   :  { %v405_v63 = vmul.f32 0.0009765625, %v400_v61 }
 0x1fc   :  { %v339_v0 = vpop.permute.xlu0 %338  ;;  %v388_v1 = vpop.permute.xlu1 %387 }
 0x1fd   :  { %v401_v2 = vadd.f32 %v388_v1, %v346_v62  ;;  %425 = vrot.lane.b32.xlu1 %v405_v63, %s574_s4  ;;  %v349_v4 = vsub.f32 %v731_v21, %v339_v0 }
 0x1ff   :  { %v406_v5 = vmul.f32 0.0009765625, %v401_v2 }
 0x200   :  { %v394_v6 = vpop.permute.xlu0 %393  ;;  %v390_v7 = vpop.permute.xlu1 %389 }
 0x201   :  { %v404_v8 = vadd.f32 %v394_v6, %v349_v4  ;;  %v402_v9 = vadd.f32 %v390_v7, %v347_v3  ;;  %427 = vrot.lane.b32.xlu0 %v406_v5, %s574_s4 }
 0x203   :  { %v407_v11 = vmul.f32 0.0009765625, %v402_v9  ;;  %v409_v12 = vmul.f32 0.0009765625, %v404_v8 }
 0x204   :  { %v392_v13 = vpop.permute.xlu1 %391 }
 0x205   :  { %v403_v14 = vadd.f32 %v392_v13, %v348_v10  ;;  %429 = vrot.lane.b32.xlu1 %v407_v11, %s574_s4  ;;  %v419_v17 = vsel %vm414_vm9, %v409_v12, 0.0 }
 0x207   :  { %v408_v16 = vmul.f32 0.0009765625, %v403_v14 }
 0x209   :  { %433 = vrot.lane.b32.xlu1 %v419_v17, %s574_s4  ;;  %431 = vrot.lane.b32.xlu0 %v408_v16, %s574_s4 }
 0x26f   :  { %v426_v18 = vpop.permute.xlu1 %425 }
 0x270   :  { %v441_v22 = vsel %vm440_vm10, %v426_v18, 0.0 }
 0x273   :  { %v428_v19 = vpop.permute.xlu0 %427 }
 0x274   :  { %v442_v20 = vsel %vm440_vm10, %v428_v19, 0.0 }
 0x275   :  { %v443_v24 = vadd.f32 %v442_v20, %v441_v22 }
 0x277   :  { %v430_v21 = vpop.permute.xlu1 %429 }
 0x278   :  { %v444_v23 = vsel %vm440_vm10, %v430_v21, 0.0 }
 0x279   :  { %v445_v15 = vadd.f32 %v444_v23, %v443_v24 }
 0x27b   :  { %v432_v25 = vpop.permute.xlu0 %431  ;;  %v434_v26 = vpop.permute.xlu1 %433 }
 0x27c   :  { %v446_v27 = vsel %vm440_vm10, %v432_v25, 0.0  ;;  %v448_v29 = vsel %vm440_vm10, %v434_v26, 0.0 }
 0x27d   :  { %v447_v28 = vadd.f32 %v446_v27, %v445_v15 }
 0x27f   :  { %v449_v30 = vadd.f32 %v448_v29, %v447_v28 }
 0x281   :  { %450 = vadd.xlane.f32.xlu0 %v449_v30 }
 0x30e   :  { %v451_v54 = vpop.xlane.xlu0 %450 }
 0x30f   :  { %v452_v31 = vrot.slane %v451_v54, 4 }
 0x311   :  { %v453_v32 = vadd.f32 %v452_v31, %v451_v54 }
 0x313   :  { %v454_v33 = vrot.slane %v453_v32, 2 }
 0x315   :  { %v455_v34 = vadd.f32 %v454_v33, %v453_v32 }
 0x317   :  { %v456_v35 = vrot.slane %v455_v34, 1 }
 0x319   :  { %v457_v36 = vadd.f32 %v456_v35, %v455_v34 }
 0x31b   :  { %502 = vpush %v457_v36 }
 0x34c   :  { %s503_s5 = spop %502 }
 0x34d   :  { %460 = sst [smem:[#allocation7]] %s503_s5 }
 0x34e   :  { %563 = shalt.err (!%p560_p4)
}
 0x34f   :  { %s575_s13 = smov [#allocation7]  }
 0x350   :  { %468 = dma.smem_to_hbm %s575_s13, 16, %s771_s2, [#allocation4]  }
 0x351   :  { %568 = dma.done.wait [#allocation4], 16  }
 0x352   :  { %569 = vsyncadd [#allocation4], 4294967280 }
 0x353   :  { %472 = sfence }
 0x354   :  { %473 = vsyncpa [#allocation3], 1 }
 0x355   :  { %474 = vsyncpa [#allocation6], 1 }
 0x356   :  { %475 = vsyncpa [#allocation4], 1 }

</bundles_post_ra>
